<compile_context>
chip_gen: v6e
topology: v6e:2x2x1
jax: 0.10.0
libtpu: 0.0.40
codegen_flags: <defaults>
</compile_context>

<pallas_src>
import functools

import jax
import jax.numpy as jnp
from jax import lax
from jax.experimental import pallas as pl
from jax.experimental.pallas import tpu as pltpu

LN_EPS = 1e-5
OUT_W = 128          # lane-dense output width (>= n_actions, multiple of 128)
TB_CAP = 2048        # per-step batch tile cap (safe for v5e/v6e/v7x scoped VMEM)


def _round_up(x, m):
    return ((x + m - 1) // m) * m


# --------------------------------------------------------------------------
# Kernel
# --------------------------------------------------------------------------
def _ln_fast(h, gamma, beta):
    # LayerNorm with var = E[h^2] - mu^2: the two lane reductions are
    # independent XLU pushes (not serialized), f32 accumulation.
    mu = jnp.mean(h, axis=-1, keepdims=True)
    ms = jnp.mean(h * h, axis=-1, keepdims=True)
    var = ms - mu * mu
    return (h - mu) * lax.rsqrt(var + LN_EPS) * gamma + beta


def dqn_kernel(x_ref, w_ref, p_ref, q_ref, *, n_obs, r_obs, matmul_dtype):
    mm = matmul_dtype
    x = x_ref[...].astype(mm)                                   # cast in-kernel

    # feature_layer: Linear(n_obs,128) -> LN(128) -> ReLU
    w1 = w_ref[0:n_obs, :]                                      # (n_obs, 128)
    h = jnp.dot(x, w1, preferred_element_type=jnp.float32) + p_ref[0:1, :]
    h = jnp.maximum(_ln_fast(h, p_ref[1:2, :], p_ref[2:3, :]), 0.0)

    #                Linear(128,64) -> LN(64) -> ReLU
    w2 = w_ref[r_obs:r_obs + 128, 0:64]                         # (128, 64)
    h = jnp.dot(h.astype(mm), w2, preferred_element_type=jnp.float32) \
        + p_ref[3:4, 0:64]
    h = jnp.maximum(_ln_fast(h, p_ref[4:5, 0:64], p_ref[5:6, 0:64]), 0.0)

    #                Linear(64,32) -> LN(32) -> ReLU
    w3 = w_ref[r_obs + 128:r_obs + 192, 0:32]                   # (64, 32)
    h = jnp.dot(h.astype(mm), w3, preferred_element_type=jnp.float32) \
        + p_ref[6:7, 0:32]
    h = jnp.maximum(_ln_fast(h, p_ref[7:8, 0:32], p_ref[8:9, 0:32]), 0.0)

    # fused value/advantage hidden layer: hh = relu(h @ [wv1|wa1] + [bv1|ba1])
    wh1 = w_ref[r_obs + 192:r_obs + 224, 0:32]                  # (32, 32)
    hh = jnp.maximum(
        jnp.dot(h.astype(mm), wh1, preferred_element_type=jnp.float32)
        + p_ref[9:10, 0:32],
        0.0,
    )

    # folded dueling head: q = hh @ W_q + b_q, lane-dense (tb, 128) store.
    wq = w_ref[r_obs + 224:r_obs + 256, :]                      # (32, 128)
    q_ref[...] = jnp.dot(hh.astype(mm), wq,
                         preferred_element_type=jnp.float32) + p_ref[10:11, :]


# --------------------------------------------------------------------------
# One-time parameter packing (hoisted out of the per-call hot path)
# --------------------------------------------------------------------------
def pack_params(params, matmul_dtype=jnp.bfloat16):
    """Fold the heads + dueling combine, and pack everything into two slabs:
      wslab : (r_obs + 256, 128) matmul_dtype  -- w1 | w2 | w3 | wh1 | W_q
      pslab : (16, 128) float32                -- biases + LayerNorm params
    Call once; reuse the result for every forward call."""
    f32 = jnp.float32
    n_obs = params["w1"].shape[0]
    n_actions = params["wa2"].shape[1]
    assert n_actions <= OUT_W, "n_actions must be <= 128"

    r_obs = _round_up(max(n_obs, 1), 16)
    n_rows = r_obs + 256

    # fused value/advantage hidden layer
    wh1 = jnp.concatenate([params["wv1"], params["wa1"]], axis=1)       # (32, 32)
    bh1 = jnp.concatenate([params["bv1"], params["ba1"]], axis=1)       # (1, 32)

    # fold dueling combine into the output head (exact f32 algebra):
    #   q_j = hv@wv2 + ha@(wa2[:,j] - mean_k wa2[:,k]) + bv2 + ba2_j - mean(ba2)
    wa2c = params["wa2"] - jnp.mean(params["wa2"], axis=1, keepdims=True)
    ba2c = params["ba2"] - jnp.mean(params["ba2"], axis=1, keepdims=True)
    wq = jnp.concatenate(
        [jnp.broadcast_to(params["wv2"], (16, n_actions)), wa2c], axis=0)  # (32, A)
    bq = params["bv2"] + ba2c                                              # (1, A)

    # ---- weight slab (single bf16 cast at the end) -------------------------
    wslab = jnp.zeros((n_rows, OUT_W), f32)
    wslab = wslab.at[0:n_obs, 0:128].set(params["w1"])
    wslab = wslab.at[r_obs:r_obs + 128, 0:64].set(params["w2"])
    wslab = wslab.at[r_obs + 128:r_obs + 192, 0:32].set(params["w3"])
    wslab = wslab.at[r_obs + 192:r_obs + 224, 0:32].set(wh1)
    wslab = wslab.at[r_obs + 224:r_obs + 256, 0:n_actions].set(wq)
    wslab = wslab.astype(matmul_dtype)

    # ---- bias / LayerNorm slab (f32) ---------------------------------------
    pslab = jnp.zeros((16, OUT_W), f32)
    pslab = pslab.at[0, 0:128].set(params["b1"][0])
    pslab = pslab.at[1, 0:128].set(params["g1"][0])
    pslab = pslab.at[2, 0:128].set(params["be1"][0])
    pslab = pslab.at[3, 0:64].set(params["b2"][0])
    pslab = pslab.at[4, 0:64].set(params["g2"][0])
    pslab = pslab.at[5, 0:64].set(params["be2"][0])
    pslab = pslab.at[6, 0:32].set(params["b3"][0])
    pslab = pslab.at[7, 0:32].set(params["g3"][0])
    pslab = pslab.at[8, 0:32].set(params["be3"][0])
    pslab = pslab.at[9, 0:32].set(bh1[0])
    pslab = pslab.at[10, 0:n_actions].set(bq[0])

    return dict(
        wslab=wslab, pslab=pslab, matmul_dtype=matmul_dtype,
        n_obs=int(n_obs), r_obs=int(r_obs), n_actions=int(n_actions),
    )


# --------------------------------------------------------------------------
# Tiling heuristics (generation-aware)
# --------------------------------------------------------------------------
def _tensorcores_per_chip():
    # Perf heuristic only (no correctness impact): v7x exposes 2 TensorCores
    # behind one device and benefits from an even >=2-way grid split.
    try:
        kind = jax.devices()[0].device_kind.lower()
    except Exception:
        return 1
    return 2 if "v7" in kind else 1


def _pick_tb(B, cores, cap=TB_CAP):
    Bp = _round_up(B, 8)
    min_steps = 2 if (cores >= 2 and Bp >= 16) else 1
    steps = max(min_steps, pl.cdiv(Bp, cap))
    return _round_up(pl.cdiv(Bp, steps), 8)


# --------------------------------------------------------------------------
# Forward wrapper
# --------------------------------------------------------------------------
def dqn_forward(x, packed, *, tb=None):
    """x: (B, n_obs) float32.  packed: output of pack_params()."""
    wslab, pslab = packed["wslab"], packed["pslab"]
    n_obs, r_obs = packed["n_obs"], packed["r_obs"]
    n_actions = packed["n_actions"]
    B, n_obs_x = x.shape
    assert n_obs_x == n_obs

    if tb is None:
        tb = _pick_tb(B, _tensorcores_per_chip())
    B_pad = _round_up(B, tb)
    if B_pad != B:
        x = jnp.pad(x, ((0, B_pad - B), (0, 0)))
    grid = B_pad // tb

    kernel = functools.partial(
        dqn_kernel, n_obs=n_obs, r_obs=r_obs,
        matmul_dtype=packed["matmul_dtype"],
    )

    # advisory cost estimate for XLA's scheduler
    flops = 2 * B_pad * (n_obs * 128 + 128 * 64 + 64 * 32 + 32 * 32 + 32 * OUT_W)
    bytes_accessed = (B_pad * n_obs * 4 + B_pad * OUT_W * 4
                      + int(wslab.size) * wslab.dtype.itemsize
                      + int(pslab.size) * 4)
    cost = pl.CostEstimate(flops=flops, transcendentals=3 * B_pad,
                           bytes_accessed=bytes_accessed)

    q_pad = pl.pallas_call(
        kernel,
        out_shape=jax.ShapeDtypeStruct((B_pad, OUT_W), jnp.float32),
        grid_spec=pltpu.PrefetchScalarGridSpec(
            num_scalar_prefetch=0,
            grid=(grid,),
            in_specs=[
                pl.BlockSpec((tb, n_obs), lambda i: (i, 0)),
                pl.BlockSpec(wslab.shape, lambda i: (0, 0)),   # resident slab
                pl.BlockSpec(pslab.shape, lambda i: (0, 0)),   # resident slab
            ],
            out_specs=pl.BlockSpec((tb, OUT_W), lambda i: (i, 0)),
        ),
        compiler_params=pltpu.CompilerParams(
            dimension_semantics=("parallel",)),
        cost_estimate=cost,
    )(x, wslab, pslab)

    return q_pad[:B, :n_actions]


# --------------------------------------------------------------------------
# Reference + synthetic params
# --------------------------------------------------------------------------
def _layernorm_ref(h, gamma, beta):
    mu = jnp.mean(h, axis=-1, keepdims=True)
    var = jnp.mean((h - mu) ** 2, axis=-1, keepdims=True)
    return (h - mu) * lax.rsqrt(var + LN_EPS) * gamma + beta


def dqn_reference(x, p):
    """Pure-JAX f32 reference mirroring the PyTorch forward."""
    h = x @ p["w1"] + p["b1"]
    h = jnp.maximum(_layernorm_ref(h, p["g1"], p["be1"]), 0.0)
    h = h @ p["w2"] + p["b2"]
    h = jnp.maximum(_layernorm_ref(h, p["g2"], p["be2"]), 0.0)
    h = h @ p["w3"] + p["b3"]
    h = jnp.maximum(_layernorm_ref(h, p["g3"], p["be3"]), 0.0)
    v = jnp.maximum(h @ p["wv1"] + p["bv1"], 0.0) @ p["wv2"] + p["bv2"]
    a = jnp.maximum(h @ p["wa1"] + p["ba1"], 0.0) @ p["wa2"] + p["ba2"]
    return v + a - jnp.mean(a, axis=1, keepdims=True)


def init_params(key, n_observations, n_actions):
    """Deterministic synthetic parameters with the module's shapes.
    Linear weights stored as (in, out); LayerNorm gamma~1, beta~0."""
    ks = jax.random.split(key, 16)
    s = 0.1

    def lin(k, fin, fout):
        kw, kb = jax.random.split(k)
        w = s * jax.random.normal(kw, (fin, fout), jnp.float32)
        b = s * jax.random.normal(kb, (1, fout), jnp.float32)
        return w, b

    p = {}
    p["w1"], p["b1"] = lin(ks[0], n_observations, 128)
    p["w2"], p["b2"] = lin(ks[1], 128, 64)
    p["w3"], p["b3"] = lin(ks[2], 64, 32)
    p["wv1"], p["bv1"] = lin(ks[3], 32, 16)
    p["wv2"], p["bv2"] = lin(ks[4], 16, 1)
    p["wa1"], p["ba1"] = lin(ks[5], 32, 16)
    p["wa2"], p["ba2"] = lin(ks[6], 16, n_actions)
    p["g1"] = jnp.ones((1, 128), jnp.float32) + 0.01 * jax.random.normal(ks[7], (1, 128))
    p["be1"] = 0.01 * jax.random.normal(ks[8], (1, 128), jnp.float32)
    p["g2"] = jnp.ones((1, 64), jnp.float32) + 0.01 * jax.random.normal(ks[9], (1, 64))
    p["be2"] = 0.01 * jax.random.normal(ks[10], (1, 64), jnp.float32)
    p["g3"] = jnp.ones((1, 32), jnp.float32) + 0.01 * jax.random.normal(ks[11], (1, 32))
    p["be3"] = 0.01 * jax.random.normal(ks[12], (1, 32), jnp.float32)
    return p


if __name__ == "__main__":
    n_observations = 16
    n_actions = 8
    batch = 8

    key = jax.random.PRNGKey(0)
    kx, kp, kx2 = jax.random.split(key, 3)
    x = jax.random.normal(kx, (batch, n_observations), jnp.float32)
    params = init_params(kp, n_observations, n_actions)
    q_ref = dqn_reference(x, params)

    # Pack params ONCE (head fusion + dueling fold + bf16 casts hoisted here).
    packed_f32 = pack_params(params, matmul_dtype=jnp.float32)
    packed_bf16 = pack_params(params, matmul_dtype=jnp.bfloat16)

    # 1) f32 matmul path: folded head is exact algebra -> tight tolerance
    q_f32 = jax.block_until_ready(dqn_forward(x, packed_f32))
    assert q_f32.shape == (batch, n_actions)
    assert jnp.allclose(q_f32, q_ref, atol=1e-3, rtol=1e-3), (q_f32, q_ref)

    # 2) default bf16-operand path (MXU-native): looser tolerance
    q_bf16 = jax.block_until_ready(dqn_forward(x, packed_bf16))
    assert jnp.allclose(q_bf16, q_ref, atol=5e-2, rtol=5e-2), (q_bf16, q_ref)

    # 3) larger batch (multi-step "parallel" grid on v7x, single tile on v5e/v6e)
    big_batch = 256
    x_big = jax.random.normal(kx2, (big_batch, n_observations), jnp.float32)
    q_big = jax.block_until_ready(dqn_forward(x_big, packed_bf16))
    q_big_ref = dqn_reference(x_big, params)
    assert q_big.shape == (big_batch, n_actions)
    assert jnp.allclose(q_big, q_big_ref, atol=5e-2, rtol=5e-2)

    print("KERNEL_OK")
</pallas_src>

<mosaic_0001>
module attributes {stable_mosaic.version = 11 : i64} {
  func.func @dqn_kernel(%arg0: i32, %arg1: memref<8x16xf32, #tpu.memory_space<vmem>>, %arg2: memref<272x128xf32, #tpu.memory_space<vmem>>, %arg3: memref<16x128xf32, #tpu.memory_space<vmem>>, %arg4: memref<8x128xf32, #tpu.memory_space<vmem>>) attributes {dimension_semantics = [#tpu.dimension_semantics<parallel>], iteration_bounds = array<i64: 1>, scalar_prefetch = 0 : i64, scratch_operands = 0 : i64, tpu.core_type = #tpu.core_type<tc>, window_params = [{transform_indices = @transform_0, window_bounds = array<i64: 8, 16>}, {pipeline_mode = #tpu.pipeline_mode<synchronous>, transform_indices = @transform_1, window_bounds = array<i64: 272, 128>}, {pipeline_mode = #tpu.pipeline_mode<synchronous>, transform_indices = @transform_2, window_bounds = array<i64: 16, 128>}, {transform_indices = @transform_3, window_bounds = array<i64: 8, 128>}]} {
    %c0 = arith.constant 0 : index
    %c0_0 = arith.constant 0 : index
    %0 = vector.load %arg1[%c0, %c0_0] : memref<8x16xf32, #tpu.memory_space<vmem>>, vector<8x16xf32>
    %c0_1 = arith.constant 0 : index
    %c0_2 = arith.constant 0 : index
    %1 = vector.load %arg2[%c0_1, %c0_2] : memref<272x128xf32, #tpu.memory_space<vmem>>, vector<16x128xf32>
    %cst = arith.constant dense<0.000000e+00> : vector<8x128xf32>
    %2 = tpu.matmul %0, %1, %cst {dimension_numbers = #tpu.dot_dimension_numbers<[1], [0], [0], [1], [0, 0, 1, 1], [], []>} : vector<8x16xf32>, vector<16x128xf32>, vector<8x128xf32> -> vector<8x128xf32>
    %c0_3 = arith.constant 0 : index
    %c0_4 = arith.constant 0 : index
    %3 = vector.load %arg3[%c0_3, %c0_4] : memref<16x128xf32, #tpu.memory_space<vmem>>, vector<1x128xf32>
    %4 = vector.broadcast %3 : vector<1x128xf32> to vector<8x128xf32>
    %5 = arith.addf %2, %4 : vector<8x128xf32>
    %c1 = arith.constant 1 : index
    %c0_5 = arith.constant 0 : index
    %6 = vector.load %arg3[%c1, %c0_5] : memref<16x128xf32, #tpu.memory_space<vmem>>, vector<1x128xf32>
    %c2 = arith.constant 2 : index
    %c0_6 = arith.constant 0 : index
    %7 = vector.load %arg3[%c2, %c0_6] : memref<16x128xf32, #tpu.memory_space<vmem>>, vector<1x128xf32>
    %cst_7 = arith.constant dense<0.000000e+00> : vector<8xf32>
    %8 = vector.multi_reduction <add>, %5, %cst_7 [1] : vector<8x128xf32> to vector<8xf32>
    %9 = vector.shape_cast %8 : vector<8xf32> to vector<8x1xf32>
    %cst_8 = arith.constant 1.280000e+02 : f32
    %10 = vector.broadcast %cst_8 : f32 to vector<8x1xf32>
    %11 = arith.divf %9, %10 : vector<8x1xf32>
    %12 = arith.mulf %5, %5 : vector<8x128xf32>
    %cst_9 = arith.constant dense<0.000000e+00> : vector<8xf32>
    %13 = vector.multi_reduction <add>, %12, %cst_9 [1] : vector<8x128xf32> to vector<8xf32>
    %14 = vector.shape_cast %13 : vector<8xf32> to vector<8x1xf32>
    %cst_10 = arith.constant 1.280000e+02 : f32
    %15 = vector.broadcast %cst_10 : f32 to vector<8x1xf32>
    %16 = arith.divf %14, %15 : vector<8x1xf32>
    %17 = arith.mulf %11, %11 : vector<8x1xf32>
    %18 = arith.subf %16, %17 : vector<8x1xf32>
    %19 = vector.broadcast %11 : vector<8x1xf32> to vector<8x128xf32>
    %20 = arith.subf %5, %19 : vector<8x128xf32>
    %cst_11 = arith.constant 9.99999974E-6 : f32
    %21 = vector.broadcast %cst_11 : f32 to vector<8x1xf32>
    %22 = arith.addf %18, %21 : vector<8x1xf32>
    %23 = math.rsqrt %22 : vector<8x1xf32>
    %24 = vector.broadcast %23 : vector<8x1xf32> to vector<8x128xf32>
    %25 = arith.mulf %20, %24 : vector<8x128xf32>
    %26 = vector.broadcast %6 : vector<1x128xf32> to vector<8x128xf32>
    %27 = arith.mulf %25, %26 : vector<8x128xf32>
    %28 = vector.broadcast %7 : vector<1x128xf32> to vector<8x128xf32>
    %29 = arith.addf %27, %28 : vector<8x128xf32>
    %cst_12 = arith.constant 0.000000e+00 : f32
    %30 = vector.broadcast %cst_12 : f32 to vector<8x128xf32>
    %31 = arith.maximumf %29, %30 : vector<8x128xf32>
    %c16 = arith.constant 16 : index
    %c0_13 = arith.constant 0 : index
    %32 = vector.load %arg2[%c16, %c0_13] : memref<272x128xf32, #tpu.memory_space<vmem>>, vector<128x64xf32>
    %cst_14 = arith.constant dense<0.000000e+00> : vector<8x64xf32>
    %33 = tpu.matmul %31, %32, %cst_14 {dimension_numbers = #tpu.dot_dimension_numbers<[1], [0], [0], [1], [0, 0, 1, 1], [], []>} : vector<8x128xf32>, vector<128x64xf32>, vector<8x64xf32> -> vector<8x64xf32>
    %c3 = arith.constant 3 : index
    %c0_15 = arith.constant 0 : index
    %34 = vector.load %arg3[%c3, %c0_15] : memref<16x128xf32, #tpu.memory_space<vmem>>, vector<1x64xf32>
    %35 = vector.broadcast %34 : vector<1x64xf32> to vector<8x64xf32>
    %36 = arith.addf %33, %35 : vector<8x64xf32>
    %c4 = arith.constant 4 : index
    %c0_16 = arith.constant 0 : index
    %37 = vector.load %arg3[%c4, %c0_16] : memref<16x128xf32, #tpu.memory_space<vmem>>, vector<1x64xf32>
    %c5 = arith.constant 5 : index
    %c0_17 = arith.constant 0 : index
    %38 = vector.load %arg3[%c5, %c0_17] : memref<16x128xf32, #tpu.memory_space<vmem>>, vector<1x64xf32>
    %cst_18 = arith.constant dense<0.000000e+00> : vector<8xf32>
    %39 = vector.multi_reduction <add>, %36, %cst_18 [1] : vector<8x64xf32> to vector<8xf32>
    %40 = vector.shape_cast %39 : vector<8xf32> to vector<8x1xf32>
    %cst_19 = arith.constant 6.400000e+01 : f32
    %41 = vector.broadcast %cst_19 : f32 to vector<8x1xf32>
    %42 = arith.divf %40, %41 : vector<8x1xf32>
    %43 = arith.mulf %36, %36 : vector<8x64xf32>
    %cst_20 = arith.constant dense<0.000000e+00> : vector<8xf32>
    %44 = vector.multi_reduction <add>, %43, %cst_20 [1] : vector<8x64xf32> to vector<8xf32>
    %45 = vector.shape_cast %44 : vector<8xf32> to vector<8x1xf32>
    %cst_21 = arith.constant 6.400000e+01 : f32
    %46 = vector.broadcast %cst_21 : f32 to vector<8x1xf32>
    %47 = arith.divf %45, %46 : vector<8x1xf32>
    %48 = arith.mulf %42, %42 : vector<8x1xf32>
    %49 = arith.subf %47, %48 : vector<8x1xf32>
    %50 = vector.broadcast %42 : vector<8x1xf32> to vector<8x64xf32>
    %51 = arith.subf %36, %50 : vector<8x64xf32>
    %cst_22 = arith.constant 9.99999974E-6 : f32
    %52 = vector.broadcast %cst_22 : f32 to vector<8x1xf32>
    %53 = arith.addf %49, %52 : vector<8x1xf32>
    %54 = math.rsqrt %53 : vector<8x1xf32>
    %55 = vector.broadcast %54 : vector<8x1xf32> to vector<8x64xf32>
    %56 = arith.mulf %51, %55 : vector<8x64xf32>
    %57 = vector.broadcast %37 : vector<1x64xf32> to vector<8x64xf32>
    %58 = arith.mulf %56, %57 : vector<8x64xf32>
    %59 = vector.broadcast %38 : vector<1x64xf32> to vector<8x64xf32>
    %60 = arith.addf %58, %59 : vector<8x64xf32>
    %cst_23 = arith.constant 0.000000e+00 : f32
    %61 = vector.broadcast %cst_23 : f32 to vector<8x64xf32>
    %62 = arith.maximumf %60, %61 : vector<8x64xf32>
    %c144 = arith.constant 144 : index
    %c0_24 = arith.constant 0 : index
    %63 = vector.load %arg2[%c144, %c0_24] : memref<272x128xf32, #tpu.memory_space<vmem>>, vector<64x32xf32>
    %cst_25 = arith.constant dense<0.000000e+00> : vector<8x32xf32>
    %64 = tpu.matmul %62, %63, %cst_25 {dimension_numbers = #tpu.dot_dimension_numbers<[1], [0], [0], [1], [0, 0, 1, 1], [], []>} : vector<8x64xf32>, vector<64x32xf32>, vector<8x32xf32> -> vector<8x32xf32>
    %c6 = arith.constant 6 : index
    %c0_26 = arith.constant 0 : index
    %65 = vector.load %arg3[%c6, %c0_26] : memref<16x128xf32, #tpu.memory_space<vmem>>, vector<1x32xf32>
    %66 = vector.broadcast %65 : vector<1x32xf32> to vector<8x32xf32>
    %67 = arith.addf %64, %66 : vector<8x32xf32>
    %c7 = arith.constant 7 : index
    %c0_27 = arith.constant 0 : index
    %68 = vector.load %arg3[%c7, %c0_27] : memref<16x128xf32, #tpu.memory_space<vmem>>, vector<1x32xf32>
    %c8 = arith.constant 8 : index
    %c0_28 = arith.constant 0 : index
    %69 = vector.load %arg3[%c8, %c0_28] : memref<16x128xf32, #tpu.memory_space<vmem>>, vector<1x32xf32>
    %cst_29 = arith.constant dense<0.000000e+00> : vector<8xf32>
    %70 = vector.multi_reduction <add>, %67, %cst_29 [1] : vector<8x32xf32> to vector<8xf32>
    %71 = vector.shape_cast %70 : vector<8xf32> to vector<8x1xf32>
    %cst_30 = arith.constant 3.200000e+01 : f32
    %72 = vector.broadcast %cst_30 : f32 to vector<8x1xf32>
    %73 = arith.divf %71, %72 : vector<8x1xf32>
    %74 = arith.mulf %67, %67 : vector<8x32xf32>
    %cst_31 = arith.constant dense<0.000000e+00> : vector<8xf32>
    %75 = vector.multi_reduction <add>, %74, %cst_31 [1] : vector<8x32xf32> to vector<8xf32>
    %76 = vector.shape_cast %75 : vector<8xf32> to vector<8x1xf32>
    %cst_32 = arith.constant 3.200000e+01 : f32
    %77 = vector.broadcast %cst_32 : f32 to vector<8x1xf32>
    %78 = arith.divf %76, %77 : vector<8x1xf32>
    %79 = arith.mulf %73, %73 : vector<8x1xf32>
    %80 = arith.subf %78, %79 : vector<8x1xf32>
    %81 = vector.broadcast %73 : vector<8x1xf32> to vector<8x32xf32>
    %82 = arith.subf %67, %81 : vector<8x32xf32>
    %cst_33 = arith.constant 9.99999974E-6 : f32
    %83 = vector.broadcast %cst_33 : f32 to vector<8x1xf32>
    %84 = arith.addf %80, %83 : vector<8x1xf32>
    %85 = math.rsqrt %84 : vector<8x1xf32>
    %86 = vector.broadcast %85 : vector<8x1xf32> to vector<8x32xf32>
    %87 = arith.mulf %82, %86 : vector<8x32xf32>
    %88 = vector.broadcast %68 : vector<1x32xf32> to vector<8x32xf32>
    %89 = arith.mulf %87, %88 : vector<8x32xf32>
    %90 = vector.broadcast %69 : vector<1x32xf32> to vector<8x32xf32>
    %91 = arith.addf %89, %90 : vector<8x32xf32>
    %cst_34 = arith.constant 0.000000e+00 : f32
    %92 = vector.broadcast %cst_34 : f32 to vector<8x32xf32>
    %93 = arith.maximumf %91, %92 : vector<8x32xf32>
    %c208 = arith.constant 208 : index
    %c0_35 = arith.constant 0 : index
    %94 = vector.load %arg2[%c208, %c0_35] : memref<272x128xf32, #tpu.memory_space<vmem>>, vector<32x32xf32>
    %cst_36 = arith.constant dense<0.000000e+00> : vector<8x32xf32>
    %95 = tpu.matmul %93, %94, %cst_36 {dimension_numbers = #tpu.dot_dimension_numbers<[1], [0], [0], [1], [0, 0, 1, 1], [], []>} : vector<8x32xf32>, vector<32x32xf32>, vector<8x32xf32> -> vector<8x32xf32>
    %c9 = arith.constant 9 : index
    %c0_37 = arith.constant 0 : index
    %96 = vector.load %arg3[%c9, %c0_37] : memref<16x128xf32, #tpu.memory_space<vmem>>, vector<1x32xf32>
    %97 = vector.broadcast %96 : vector<1x32xf32> to vector<8x32xf32>
    %98 = arith.addf %95, %97 : vector<8x32xf32>
    %cst_38 = arith.constant 0.000000e+00 : f32
    %99 = vector.broadcast %cst_38 : f32 to vector<8x32xf32>
    %100 = arith.maximumf %98, %99 : vector<8x32xf32>
    %c240 = arith.constant 240 : index
    %c0_39 = arith.constant 0 : index
    %101 = vector.load %arg2[%c240, %c0_39] : memref<272x128xf32, #tpu.memory_space<vmem>>, vector<32x128xf32>
    %cst_40 = arith.constant dense<0.000000e+00> : vector<8x128xf32>
    %102 = tpu.matmul %100, %101, %cst_40 {dimension_numbers = #tpu.dot_dimension_numbers<[1], [0], [0], [1], [0, 0, 1, 1], [], []>} : vector<8x32xf32>, vector<32x128xf32>, vector<8x128xf32> -> vector<8x128xf32>
    %c10 = arith.constant 10 : index
    %c0_41 = arith.constant 0 : index
    %103 = vector.load %arg3[%c10, %c0_41] : memref<16x128xf32, #tpu.memory_space<vmem>>, vector<1x128xf32>
    %104 = vector.broadcast %103 : vector<1x128xf32> to vector<8x128xf32>
    %105 = arith.addf %102, %104 : vector<8x128xf32>
    %c0_42 = arith.constant 0 : index
    %c0_43 = arith.constant 0 : index
    %106 = vector.load %arg4[%c0_42, %c0_43] : memref<8x128xf32, #tpu.memory_space<vmem>>, vector<8x128xf32>
    tpu.vector_store %arg4[%c0_42, %c0_43], %105 {strides = array<i32>} : memref<8x128xf32, #tpu.memory_space<vmem>>, vector<8x128xf32>,
    return
  }
  func.func @transform_0(%arg0: i32) -> (i32, i32) {
    %c0_i32 = arith.constant 0 : i32
    %c0_i32_0 = arith.constant 0 : i32
    return %arg0, %c0_i32 : i32, i32
  }
  func.func @transform_1(%arg0: i32) -> (i32, i32) {
    %c0_i32 = arith.constant 0 : i32
    %c0_i32_0 = arith.constant 0 : i32
    %c0_i32_1 = arith.constant 0 : i32
    return %c0_i32, %c0_i32_0 : i32, i32
  }
  func.func @transform_2(%arg0: i32) -> (i32, i32) {
    %c0_i32 = arith.constant 0 : i32
    %c0_i32_0 = arith.constant 0 : i32
    %c0_i32_1 = arith.constant 0 : i32
    return %c0_i32, %c0_i32_0 : i32, i32
  }
  func.func @transform_3(%arg0: i32) -> (i32, i32) {
    %c0_i32 = arith.constant 0 : i32
    %c0_i32_0 = arith.constant 0 : i32
    return %arg0, %c0_i32 : i32, i32
  }
}

</mosaic_0001>

<bundles_post_ra>
// kernel: tpu_custom_call.1
= control target key start
LH: loop header
LB: loop body
LE: loop exit
PB: predicated region body
PF: predicated region fallthrough
CT: control target
= control target key end

     0   :  { %8 = vsyncpa [#allocation3], 0  ;;  %s916_s0 = inlined_call_operand.hbm [shape: f32[8,16], index: 0, kind: input, shape index: {}]   ;;  %s917_s1 = inlined_call_operand.hbm [shape: f32[272,128], index: 1, kind: input, shape index: {}]   ;;  %s918_s2 = inlined_call_operand.hbm [shape: f32[16,128], index: 2, kind: input, shape index: {}]   ;;  %s919_s3 = inlined_call_operand.hbm [shape: f32[8,128], index: 3, kind: output, shape index: {}]  }
   0x1   :  { %9 = vsyncpa [#allocation6], 0 }
   0x2   :  { %10 = vsyncpa [#allocation4], 0  ;;  %s819_s12 = smov [#allocation5]  }
   0x3   :  { %s26_s13 = sshll.u32 %s819_s12, 4  ;;  %s27_s13 = int_to_ptr.vmem [resolvable:$true] %s26_s13 }
   0x4   :  { %s741_s14 = scalar_lea.vmem %s27_s13, 4352  ;;  %p746_p1 = scmp.lt.s32.totalorder %s27_s13, %s27_s13 }
   0x5   :  { %p742_p0 = scmp.ne.s32.totalorder %s27_s13, %s741_s14  ;;  %p747_p2 = scmp.lt.s32.totalorder %s741_s14, %s741_s14 }
   0x7   :  { %p748_p3 = por %p747_p2, %p746_p1 }
   0x9   :  { %p749_p4 = pnand %p748_p3, %p742_p0 }
   0xb   :  { %752 = shalt.err (!%p749_p4)
}
   0xc   :  { %s820_s15 = smov 128   ;;  %s821_s16 = smov 8  }
   0xd   :  { %32 = dma.hbm_to_vmem [thread:$0]  %s917_s1, 4352, %s27_s13, [#allocation6], %s820_s15, %s820_s15, %s821_s16  }
   0xe   :  { %s822_s19 = smov [#allocation2]   ;;  %s823_s21 = smov [#allocation7]  }
   0xf   :  { %s17_s20 = sshll.u32 %s822_s19, 4  ;;  %s38_s22 = sshll.u32 %s823_s21, 4  ;;  %s18_s20 = int_to_ptr.vmem [resolvable:$true] %s17_s20  ;;  %s39_s22 = int_to_ptr.vmem [resolvable:$true] %s38_s22 }
  0x10   :  { %s761_s23 = scalar_lea.vmem %s18_s20, 128  ;;  %p766_p6 = scmp.lt.s32.totalorder %s18_s20, %s18_s20 }
  0x11   :  { %p762_p5 = scmp.ne.s32.totalorder %s18_s20, %s761_s23  ;;  %p767_p7 = scmp.lt.s32.totalorder %s761_s23, %s761_s23 }
  0x13   :  { %p768_p8 = por %p767_p7, %p766_p6 }
  0x15   :  { %p769_p9 = pnand %p768_p8, %p762_p5 }
  0x17   :  { %772 = shalt.err (!%p769_p9)
}
  0x18   :  { %20 = dma.hbm_to_vmem [thread:$0]  %s916_s0, 128, %s18_s20, [#allocation3]  }
  0x19   :  { %s781_s26 = scalar_lea.vmem %s39_s22, 256  ;;  %p786_p11 = scmp.lt.s32.totalorder %s39_s22, %s39_s22 }
  0x1a   :  { %p782_p10 = scmp.ne.s32.totalorder %s39_s22, %s781_s26  ;;  %p787_p12 = scmp.lt.s32.totalorder %s781_s26, %s781_s26 }
  0x1c   :  { %p788_p13 = por %p787_p12, %p786_p11 }
  0x1e   :  { %p789_p0 = pnand %p788_p13, %p782_p10 }
  0x20   :  { %792 = shalt.err (!%p789_p0)
}
  0x21   :  { %44 = dma.hbm_to_vmem [thread:$0]  %s918_s2, 256, %s39_s22, [#allocation6], %s820_s15, %s820_s15, %s821_s16  }
  0x22   :  { %813 = dma.done.wait [#allocation3], 128  }
  0x23   :  { %814 = vsyncadd [#allocation3], 4294967168 }
  0x24   :  { %815 = dma.done.wait [#allocation6], 4608  }
  0x25   :  { %816 = vsyncadd [#allocation6], 4294962688  ;;  %v824_v0 = vmov 0.0   ;;  %vm825_vm0 = vmmov 0   ;;  %v56_v1 = vld [vmem:[#allocation5 + $0x8] sm:$0xff]  ;;  %v55_v2 = vld [vmem:[#allocation5] sm:$0xff] }
  0x26   :  { %636 = vmatprep.subr.mxu0 %v824_v0  ;;  %640 = vmatprep.mubr.msk.f32.mxu0 %vm825_vm0, %v824_v0  ;;  %v54_v3 = vld [vmem:[#allocation2] sm:$0xff]  ;;  %vm62_vm1 = vcmask 130048   ;;  %v582_v4 = vld [vmem:[#allocation7] ss:$0 sm:$0xff]  ;;  %v178_v9 = vld [vmem:[#allocation5 + $0x88] sm:$0xff]  ;;  %vm256_vm2 = vcmask 523264  }
  0x27   :  { %643 = vmatprep.subr.mxu1 %v824_v0  ;;  %675 = vmatprep.mubr.msk.f32.mxu1 %vm825_vm0, %v824_v0  ;;  %v177_v10 = vld [vmem:[#allocation5 + $0x80] sm:$0xff]  ;;  %v176_v11 = vld [vmem:[#allocation5 + $0x78] sm:$0xff]  ;;  %v175_v12 = vld [vmem:[#allocation5 + $0x70] sm:$0xff]  ;;  %vm372_vm3 = vcmask 261120   ;;  %s826_s0 = smov [#allocation8]  }
  0x28   :  { %637 = vmatpush3.msra.mxu0 %v56_v1  ;;  %644 = vmatpush3.msra.mxu1 %v178_v9  ;;  %v174_v13 = vld [vmem:[#allocation5 + $0x68] sm:$0xff]  ;;  %v173_v14 = vld [vmem:[#allocation5 + $0x60] sm:$0xff]  ;;  %v172_v15 = vld [vmem:[#allocation5 + $0x58] sm:$0xff]  ;;  %s572_s2 = sshll.u32 %s826_s0, 4  ;;  %s573_s2 = int_to_ptr.vmem [resolvable:$true] %s572_s2 }
  0x29   :  { %638 = vmatprep.subr.mxu0 %v824_v0  ;;  %645 = vmatprep.subr.mxu1 %v824_v0  ;;  %v171_v16 = vld [vmem:[#allocation5 + $0x50] sm:$0xff]  ;;  %v170_v17 = vld [vmem:[#allocation5 + $0x48] sm:$0xff]  ;;  %v169_v18 = vld [vmem:[#allocation5 + $0x40] sm:$0xff]  ;;  %s793_s28 = scalar_lea.vmem %s573_s2, 128  ;;  %p798_p2 = scmp.lt.s32.totalorder %s573_s2, %s573_s2 }
  0x2a   :  { %639 = vmatpush3.msra.mxu0 %v55_v2  ;;  %646 = vmatpush3.msra.mxu1 %v177_v10  ;;  %v168_v19 = vld [vmem:[#allocation5 + $0x38] sm:$0xff]  ;;  %v167_v20 = vld [vmem:[#allocation5 + $0x30] sm:$0xff]  ;;  %v166_v21 = vld [vmem:[#allocation5 + $0x28] sm:$0xff]  ;;  %p794_p1 = scmp.ne.s32.totalorder %s573_s2, %s793_s28  ;;  %p799_p3 = scmp.lt.s32.totalorder %s793_s28, %s793_s28 }
  0x2b   :  { %641 = vmatmul.mubr.msk.f32.vlgmr.msra.gmra.mxu0 %vm62_vm1, %v54_v3  ;;  %678 = vmatprep.subr.mxu0 %v824_v0  ;;  %v165_v22 = vld [vmem:[#allocation5 + $0x20] sm:$0xff]  ;;  %v164_v23 = vld [vmem:[#allocation5 + $0x18] sm:$0xff]  ;;  %v163_v24 = vld [vmem:[#allocation5 + $0x10] sm:$0xff] }
  0x2c   :  { %694 = vmatprep.mubr.msk.f32.mxu0 %vm825_vm0, %v824_v0  ;;  %647 = vmatprep.subr.mxu1 %v824_v0  ;;  %v584_v34 = vld [vmem:[#allocation7 + $0x1] ss:$0 sm:$0xff]  ;;  %v585_v36 = vld [vmem:[#allocation7 + $0x2] ss:$0 sm:$0xff]  ;;  %v586_v40 = vld [vmem:[#allocation7 + $0x3] ss:$0 sm:$0xff]  ;;  %p800_p4 = por %p799_p3, %p798_p2 }
  0x2d   :  { %648 = vmatpush3.msra.mxu1 %v176_v11  ;;  %v291_v47 = vld [vmem:[#allocation5 + $0xc8] sm:$0xff]  ;;  %v290_v48 = vld [vmem:[#allocation5 + $0xc0] sm:$0xff]  ;;  %v289_v49 = vld [vmem:[#allocation5 + $0xb8] sm:$0xff] }
  0x2e   :  { %649 = vmatprep.subr.mxu1 %v824_v0  ;;  %679 = vmatpush3.msra.mxu0 %v291_v47  ;;  %v288_v50 = vld [vmem:[#allocation5 + $0xb0] sm:$0xff]  ;;  %v287_v51 = vld [vmem:[#allocation5 + $0xa8] sm:$0xff]  ;;  %v286_v52 = vld [vmem:[#allocation5 + $0xa0] sm:$0xff]  ;;  %p801_p5 = pnand %p800_p4, %p794_p1 }
  0x2f   :  { %650 = vmatpush3.msra.mxu1 %v175_v12  ;;  %680 = vmatprep.subr.mxu0 %v824_v0  ;;  %v285_v53 = vld [vmem:[#allocation5 + $0x98] sm:$0xff]  ;;  %v284_v54 = vld [vmem:[#allocation5 + $0x90] sm:$0xff] }
  0x30   :  { %651 = vmatprep.subr.mxu1 %v824_v0  ;;  %681 = vmatpush3.msra.mxu0 %v290_v48  ;;  %v587_v1 = vld [vmem:[#allocation7 + $0x4] ss:$0 sm:$0xff]  ;;  %v588_v3 = vld [vmem:[#allocation7 + $0x5] ss:$0 sm:$0xff] }
  0x31   :  { %652 = vmatpush3.msra.mxu1 %v174_v13  ;;  %682 = vmatprep.subr.mxu0 %v824_v0 }
  0x32   :  { %653 = vmatprep.subr.mxu1 %v824_v0  ;;  %683 = vmatpush3.msra.mxu0 %v289_v49 }
  0x33   :  { %654 = vmatpush3.msra.mxu1 %v173_v14  ;;  %684 = vmatprep.subr.mxu0 %v824_v0  ;;  %v403_v14 = vld [vmem:[#allocation5 + $0xe8] sm:$0xff] }
  0x34   :  { %655 = vmatprep.subr.mxu1 %v824_v0  ;;  %685 = vmatpush3.msra.mxu0 %v288_v50 }
  0x35   :  { %656 = vmatpush3.msra.mxu1 %v172_v15  ;;  %686 = vmatprep.subr.mxu0 %v824_v0  ;;  %v402_v15 = vld [vmem:[#allocation5 + $0xe0] sm:$0xff] }
  0x36   :  { %657 = vmatprep.subr.mxu1 %v824_v0  ;;  %687 = vmatpush3.msra.mxu0 %v287_v51 }
  0x37   :  { %658 = vmatpush3.msra.mxu1 %v171_v16  ;;  %688 = vmatprep.subr.mxu0 %v824_v0  ;;  %v401_v16 = vld [vmem:[#allocation5 + $0xd8] sm:$0xff] }
  0x38   :  { %659 = vmatprep.subr.mxu1 %v824_v0  ;;  %689 = vmatpush3.msra.mxu0 %v286_v52 }
  0x39   :  { %660 = vmatpush3.msra.mxu1 %v170_v17  ;;  %690 = vmatprep.subr.mxu0 %v824_v0  ;;  %v400_v17 = vld [vmem:[#allocation5 + $0xd0] sm:$0xff] }
  0x3a   :  { %661 = vmatprep.subr.mxu1 %v824_v0  ;;  %691 = vmatpush3.msra.mxu0 %v285_v53 }
  0x3b   :  { %662 = vmatpush3.msra.mxu1 %v169_v18  ;;  %692 = vmatprep.subr.mxu0 %v824_v0 }
  0x3c   :  { %663 = vmatprep.subr.mxu1 %v824_v0  ;;  %693 = vmatpush3.msra.mxu0 %v284_v54 }
  0x3d   :  { %664 = vmatpush3.msra.mxu1 %v168_v19  ;;  %697 = vmatprep.subr.mxu0 %v824_v0 }
  0x3e   :  { %665 = vmatprep.subr.mxu1 %v824_v0 }
  0x3f   :  { %666 = vmatpush3.msra.mxu1 %v167_v20 }
  0x40   :  { %667 = vmatprep.subr.mxu1 %v824_v0 }
  0x41   :  { %668 = vmatpush3.msra.mxu1 %v166_v21 }
  0x42   :  { %669 = vmatprep.subr.mxu1 %v824_v0 }
  0x43   :  { %670 = vmatpush3.msra.mxu1 %v165_v22 }
  0x44   :  { %671 = vmatprep.subr.mxu1 %v824_v0 }
  0x45   :  { %672 = vmatpush3.msra.mxu1 %v164_v23 }
  0x46   :  { %673 = vmatprep.subr.mxu1 %v824_v0 }
  0x47   :  { %674 = vmatpush3.msra.mxu1 %v163_v24 }
  0xeb   :  { %v132_v5 = vpop.f32.mrf.mxu0 }
  0xec   :  { %v866_v6 = vadd.f32 %v582_v4, %v132_v5 }
  0xed   :  { %v642_v7 = vpop.f32.mrf.mxu0 }
  0xee   :  { %138 = vadd.xlane.f32.xlu0 %v866_v6  ;;  %v142_v8 = vmul.f32 %v866_v6, %v866_v6  ;;  %v589_v7 = vld [vmem:[#allocation7 + $0x6] ss:$0 sm:$0xff] }
  0xf2   :  { %143 = vadd.xlane.f32.xlu0 %v142_v8 }
 0x177   :  { %v139_v25 = vpop.xlane.xlu0 %138 }
 0x178   :  { %v141_v26 = vmul.f32 0.0078125, %v139_v25 }
 0x17a   :  { %v146_v28 = vmul.f32 %v141_v26, %v141_v26  ;;  %v148_v32 = vsub.f32 %v866_v6, %v141_v26 }
 0x17b   :  { %v144_v27 = vpop.xlane.xlu0 %143 }
 0x17c   :  { %v145_v29 = vmul.f32 0.0078125, %v144_v27  ;;  %v591_v27 = vld [vmem:[#allocation7 + $0x7] ss:$0 sm:$0xff] }
 0x17e   :  { %v147_v30 = vsub.f32 %v145_v29, %v146_v28  ;;  %v592_v29 = vld [vmem:[#allocation7 + $0x8] ss:$0 sm:$0xff] }
 0x180   :  { %v149_v31 = vadd.f32 1e-05, %v147_v30 }
 0x182   :  { %727 = vrsqrt.f32 %v149_v31 }
 0x18f   :  { %v728_v33 = vpop.eup %727 }
 0x190   :  { %v151_v35 = vmul.f32 %v728_v33, %v148_v32  ;;  %v486_v33 = vld [vmem:[#allocation5 + $0x108] sm:$0xff] }
 0x192   :  { %v156_v37 = vmul.f32 %v584_v34, %v151_v35  ;;  %v485_v34 = vld [vmem:[#allocation5 + $0x100] sm:$0xff]  ;;  %v484_v35 = vld [vmem:[#allocation5 + $0xf8] sm:$0xff] }
 0x194   :  { %v161_v38 = vadd.f32 %v585_v36, %v156_v37  ;;  %v483_v36 = vld [vmem:[#allocation5 + $0xf0] sm:$0xff]  ;;  %v593_v37 = vld [vmem:[#allocation7 + $0x9] ss:$0 sm:$0xff] }
 0x196   :  { %v162_v39 = vmax.f32 %v161_v38, 0.0 }
 0x198   :  { %676 = vmatmul.mubr.f32.vlgmr.msra.gmra.mxu1 %v162_v39 }
 0x258   :  { %v250_v41 = vpop.f32.mrf.mxu1 }
 0x259   :  { %v251_v42 = vadd.f32 %v586_v40, %v250_v41 }
 0x25a   :  { %v677_v43 = vpop.f32.mrf.mxu1 }
 0x25b   :  { %v257_v44 = vsel %vm256_vm2, %v251_v42, 0.0  ;;  %v262_v45 = vmul.f32 %v251_v42, %v251_v42 }
 0x25c   :  { %258 = vadd.xlane.f32.xlu1 %v257_v44 }
 0x25d   :  { %v263_v46 = vsel %vm256_vm2, %v262_v45, 0.0 }
 0x260   :  { %264 = vadd.xlane.f32.xlu1 %v263_v46 }
 0x2e5   :  { %v259_v55 = vpop.xlane.xlu1 %258 }
 0x2e6   :  { %v261_v56 = vmul.f32 0.015625, %v259_v55 }
 0x2e8   :  { %v267_v58 = vmul.f32 %v261_v56, %v261_v56  ;;  %v269_v62 = vsub.f32 %v251_v42, %v261_v56  ;;  %v595_v42 = vld [vmem:[#allocation7 + $0xa] ss:$0 sm:$0xff] }
 0x2e9   :  { %v265_v57 = vpop.xlane.xlu1 %264 }
 0x2ea   :  { %v266_v59 = vmul.f32 0.015625, %v265_v57 }
 0x2ec   :  { %v268_v60 = vsub.f32 %v266_v59, %v267_v58 }
 0x2ee   :  { %v270_v61 = vadd.f32 1e-05, %v268_v60 }
 0x2f0   :  { %729 = vrsqrt.f32 %v270_v61 }
 0x2fd   :  { %v730_v63 = vpop.eup %729 }
 0x2fe   :  { %v272_v2 = vmul.f32 %v730_v63, %v269_v62 }
 0x300   :  { %v277_v4 = vmul.f32 %v587_v1, %v272_v2 }
 0x302   :  { %v282_v5 = vadd.f32 %v588_v3, %v277_v4 }
 0x304   :  { %v283_v6 = vmax.f32 %v282_v5, 0.0 }
 0x306   :  { %695 = vmatmul.mubr.msk.f32.vlgmr.msra.gmra.mxu0 %vm256_vm2, %v283_v6 }
 0x307   :  { %705 = vmatprep.mubr.msk.f32.mxu0 %vm825_vm0, %v824_v0  ;;  %698 = vmatpush3.msra.mxu0 %v403_v14 }
 0x308   :  { %699 = vmatprep.subr.mxu0 %v824_v0 }
 0x309   :  { %700 = vmatpush3.msra.mxu0 %v402_v15 }
 0x30a   :  { %701 = vmatprep.subr.mxu0 %v824_v0 }
 0x30b   :  { %702 = vmatpush3.msra.mxu0 %v401_v16 }
 0x30c   :  { %703 = vmatprep.subr.mxu0 %v824_v0 }
 0x30d   :  { %704 = vmatpush3.msra.mxu0 %v400_v17 }
 0x30e   :  { %708 = vmatprep.subr.mxu0 %v824_v0 }
 0x3c6   :  { %v366_v8 = vpop.f32.mrf.mxu0 }
 0x3c7   :  { %v367_v9 = vadd.f32 %v589_v7, %v366_v8 }
 0x3c8   :  { %v696_v10 = vpop.f32.mrf.mxu0 }
 0x3c9   :  { %v373_v11 = vsel %vm372_vm3, %v367_v9, 0.0  ;;  %v378_v12 = vmul.f32 %v367_v9, %v367_v9 }
 0x3ca   :  { %374 = vadd.xlane.f32.xlu0 %v373_v11 }
 0x3cb   :  { %v379_v13 = vsel %vm372_vm3, %v378_v12, 0.0 }
 0x3cc   :  { %380 = vadd.xlane.f32.xlu1 %v379_v13 }
 0x453   :  { %v375_v18 = vpop.xlane.xlu0 %374 }
 0x454   :  { %v377_v19 = vmul.f32 0.03125, %v375_v18 }
 0x455   :  { %v381_v20 = vpop.xlane.xlu1 %380 }
 0x456   :  { %v383_v21 = vmul.f32 %v377_v19, %v377_v19  ;;  %v382_v22 = vmul.f32 0.03125, %v381_v20  ;;  %v385_v25 = vsub.f32 %v367_v9, %v377_v19 }
 0x458   :  { %v384_v23 = vsub.f32 %v382_v22, %v383_v21 }
 0x45a   :  { %v386_v24 = vadd.f32 1e-05, %v384_v23 }
 0x45c   :  { %731 = vrsqrt.f32 %v386_v24 }
 0x469   :  { %v732_v26 = vpop.eup %731 }
 0x46a   :  { %v388_v28 = vmul.f32 %v732_v26, %v385_v25 }
 0x46c   :  { %v393_v30 = vmul.f32 %v591_v27, %v388_v28 }
 0x46e   :  { %v398_v31 = vadd.f32 %v592_v29, %v393_v30 }
 0x470   :  { %v399_v32 = vmax.f32 %v398_v31, 0.0 }
 0x472   :  { %706 = vmatmul.mubr.msk.f32.vlgmr.msra.gmra.mxu0 %vm372_vm3, %v399_v32 }
 0x473   :  { %709 = vmatpush3.msra.mxu0 %v486_v33  ;;  %716 = vmatprep.mubr.msk.f32.mxu0 %vm825_vm0, %v824_v0 }
 0x474   :  { %710 = vmatprep.subr.mxu0 %v824_v0 }
 0x475   :  { %711 = vmatpush3.msra.mxu0 %v485_v34 }
 0x476   :  { %712 = vmatprep.subr.mxu0 %v824_v0 }
 0x477   :  { %713 = vmatpush3.msra.mxu0 %v484_v35 }
 0x478   :  { %714 = vmatprep.subr.mxu0 %v824_v0 }
 0x479   :  { %715 = vmatpush3.msra.mxu0 %v483_v36 }
 0x532   :  { %v478_v38 = vpop.f32.mrf.mxu0 }
 0x533   :  { %v479_v39 = vadd.f32 %v593_v37, %v478_v38 }
 0x534   :  { %v707_v40 = vpop.f32.mrf.mxu0 }
 0x535   :  { %v482_v41 = vmax.f32 %v479_v39, 0.0 }
 0x537   :  { %717 = vmatmul.mubr.msk.f32.vlgmr.msra.gmra.mxu0 %vm372_vm3, %v482_v41 }
 0x5f7   :  { %v561_v43 = vpop.f32.mrf.mxu0 }
 0x5f8   :  { %v562_v44 = vadd.f32 %v595_v42, %v561_v43 }
 0x5f9   :  { %v718_v45 = vpop.f32.mrf.mxu0 }
 0x5fa   :  { %565 = vst [vmem:[#allocation8] sm:$0xff] %v562_v44 }
 0x5fb   :  { %804 = shalt.err (!%p801_p5)
}
 0x5fc   :  { %575 = dma.vmem_to_hbm [thread:$0]  %s573_s2, 128, %s919_s3, [#allocation4]  }
 0x5fd   :  { %817 = dma.done.wait [#allocation4], 128  }
 0x5fe   :  { %818 = vsyncadd [#allocation4], 4294967168 }
 0x5ff   :  { %579 = vsyncpa [#allocation3], 1 }
 0x600   :  { %580 = vsyncpa [#allocation6], 1 }
 0x601   :  { %581 = vsyncpa [#allocation4], 1 }

</bundles_post_ra>
